<compile_context>
chip_gen: v7x
topology: tpu7x:2x2x1
jax: 0.10.0
libtpu: 0.0.40
codegen_flags: <defaults>
</compile_context>

<pallas_src>
import functools

import jax
import jax.numpy as jnp
from jax.experimental import pallas as pl
from jax.experimental.pallas import tpu as pltpu


def _round_up(x, m):
    return (x + m - 1) // m * m


def _conv_lrelu_kernel(x_ref, w_ref, b_ref, o_ref, *,
                       bt, kh_sz, kw_sz, wp, m_p, act, neg_slope):
    # x_ref : (Bt, Cin, L)        zero-padded images, row-major flattened, L 128-aligned
    # w_ref : (KH*KW, Cout, Cin)  per-tap weight matrices
    # b_ref : (Cout, 1)
    # o_ref : (Bt, Cout, M_p)     lane-dense output (row stride Wp, M padded to 128)
    cout = o_ref.shape[1]
    # Hoisted bias broadcast (JAX does not CSE broadcast_in_dim inside the loops).
    bias = jnp.broadcast_to(b_ref[...].astype(jnp.float32), (cout, m_p))

    for b in range(bt):
        acc = bias                                           # f32 accumulator, seeded with bias
        for kh in range(kh_sz):
            for kw in range(kw_sz):
                t = kh * kw_sz + kw
                off = kh * wp + kw
                # Flat-shift tap: contiguous lane slice of the padded image,
                # read directly from the ref (no large values held live).
                x_tap = x_ref[b, :, pl.ds(off, m_p)]         # (Cin, M_p)
                acc = acc + jnp.dot(w_ref[t], x_tap,
                                    preferred_element_type=jnp.float32)
        if act:
            acc = jnp.where(acc >= 0, acc, neg_slope * acc)  # LeakyReLU(0.2)
        o_ref[b] = acc.astype(o_ref.dtype)                   # unmasked lane-dense store


def conv_block_pallas(x_nchw, weight_oihw, bias, *, stride=1, padding=1,
                      act=True, neg_slope=0.2):
    """ConVBlock forward. x_nchw: [N, Cin, H, W] -> [N, Cout, Hout, Wout]."""
    n, cin, h, w = x_nchw.shape
    cout, cin_w, kh_sz, kw_sz = weight_oihw.shape
    assert cin == cin_w
    # TODO(synk): only the stride=1 flat-shift formulation is implemented.
    assert stride == 1, "only stride=1 is implemented in the Pallas path"

    hp, wp = h + 2 * padding, w + 2 * padding
    h_out = hp - kh_sz + 1
    w_out = wp - kw_sz + 1

    m = h_out * wp                                   # valid flat output length
    m_p = _round_up(m, 128)                          # lane-dense matmul / store width
    max_off = (kh_sz - 1) * wp + (kw_sz - 1)
    l_flat = _round_up(max_off + m_p, 128)           # covers every shifted tap read
    # l_flat >= hp*wp always (Hout + KH - 1 == Hp), so the pad below is non-negative.

    # Zero padding + flattening done once in the wrapper (no in-kernel memset/scatter);
    # the extra lanes [Hp*Wp, L) are genuine zeros so tap reads past the image are safe.
    xp = jnp.pad(x_nchw, ((0, 0), (0, 0), (padding, padding), (padding, padding)))
    x_flat = jnp.pad(xp.reshape(n, cin, hp * wp),
                     ((0, 0), (0, 0), (0, l_flat - hp * wp)))

    # Per-tap weight matrices: tap t = kh*KW + kw  ->  (Cout, Cin).
    w_taps = jnp.transpose(weight_oihw, (2, 3, 0, 1)).reshape(kh_sz * kw_sz, cout, cin)
    b2 = bias.reshape(cout, 1)

    # --- pick images-per-step (Bt) from a VMEM budget; keep grid >= 2 when possible
    #     so both TensorCores of a v7x-class chip get work even at small N. ---
    itemsize = jnp.dtype(x_nchw.dtype).itemsize
    per_image = (cin * l_flat + cout * m_p) * itemsize * 2 + cout * m_p * 4
    budget = 24 << 20
    cap = int(max(1, min(8, budget // max(per_image, 1))))
    bt = 1
    for d in range(1, n + 1):
        if n % d == 0 and d <= cap and (n < 2 or n // d >= 2):
            bt = d
    grid = n // bt

    # vmem_limit from actual buffer sizes (double-buffered I/O blocks + params + acc).
    needed = (2 * bt * (cin * l_flat + cout * m_p) * itemsize
              + 2 * (kh_sz * kw_sz * cout * cin + cout) * itemsize
              + bt * cout * m_p * 4)
    vmem_limit = int(min(100 << 20, max(2 * needed + (4 << 20), 16 << 20)))

    kernel = functools.partial(
        _conv_lrelu_kernel, bt=bt, kh_sz=kh_sz, kw_sz=kw_sz, wp=wp, m_p=m_p,
        act=act, neg_slope=neg_slope)

    out_flat = pl.pallas_call(
        kernel,
        out_shape=jax.ShapeDtypeStruct((n, cout, m_p), x_nchw.dtype),
        grid_spec=pltpu.PrefetchScalarGridSpec(
            num_scalar_prefetch=0,
            grid=(grid,),
            in_specs=[
                pl.BlockSpec((bt, cin, l_flat), lambda g: (g, 0, 0)),
                pl.BlockSpec((kh_sz * kw_sz, cout, cin), lambda g: (0, 0, 0)),
                pl.BlockSpec((cout, 1), lambda g: (0, 0)),
            ],
            out_specs=pl.BlockSpec((bt, cout, m_p), lambda g: (g, 0, 0)),
        ),
        compiler_params=pltpu.CompilerParams(
            dimension_semantics=("parallel",),
            vmem_limit_bytes=vmem_limit),
    )(x_flat, w_taps, b2)

    # Crop padded M (M_p -> Hout*Wp) then padded row width (Wp -> Wout).
    # NOTE: strided copy if it doesn't fuse into a consumer; a following conv layer
    # could consume the padded-Wp layout directly instead.
    return out_flat[:, :, :m].reshape(n, cout, h_out, wp)[:, :, :, :w_out]


def _reference(x_nchw, weight_oihw, bias, *, stride, padding, act, neg_slope):
    out = jax.lax.conv_general_dilated(
        x_nchw.astype(jnp.float32), weight_oihw.astype(jnp.float32),
        window_strides=(stride, stride),
        padding=((padding, padding), (padding, padding)),
        dimension_numbers=("NCHW", "OIHW", "NCHW"))
    out = out + bias.astype(jnp.float32)[None, :, None, None]
    if act:
        out = jnp.where(out >= 0, out, neg_slope * out)
    return out


if __name__ == "__main__":
    # ConVBlock(in_c=4, out_c=8, kernel_size=3, stride=1, padding=1)
    N, CIN, COUT, H, W = 2, 4, 8, 16, 16
    KH = KW = 3
    STRIDE, PAD = 1, 1

    key = jax.random.PRNGKey(0)
    kx, kw_, kb = jax.random.split(key, 3)
    x = jax.random.normal(kx, (N, CIN, H, W), dtype=jnp.float32)
    # Deterministic synthetic parameters (PyTorch Conv2d weight shape OIHW).
    fan_in = CIN * KH * KW
    bound = 1.0 / (fan_in ** 0.5)
    weight = jax.random.uniform(kw_, (COUT, CIN, KH, KW), jnp.float32,
                                minval=-bound, maxval=bound)
    bias = jax.random.uniform(kb, (COUT,), jnp.float32,
                              minval=-bound, maxval=bound)

    out = conv_block_pallas(x, weight, bias, stride=STRIDE, padding=PAD,
                            act=True, neg_slope=0.2)
    out = jax.block_until_ready(out)

    ref = _reference(x, weight, bias, stride=STRIDE, padding=PAD,
                     act=True, neg_slope=0.2)
    assert out.shape == (N, COUT, H, W)
    assert jnp.allclose(out, ref, rtol=1e-4, atol=1e-4), "mismatch vs reference"

    print("KERNEL_OK")
</pallas_src>

<mosaic_0001>
module attributes {stable_mosaic.version = 11 : i64} {
  func.func @_conv_lrelu_kernel(%arg0: i32, %arg1: memref<1x4x512xf32, #tpu.memory_space<vmem>>, %arg2: memref<9x8x4xf32, #tpu.memory_space<vmem>>, %arg3: memref<8x1xf32, #tpu.memory_space<vmem>>, %arg4: memref<1x8x384xf32, #tpu.memory_space<vmem>>) attributes {dimension_semantics = [#tpu.dimension_semantics<parallel>], iteration_bounds = array<i64: 2>, scalar_prefetch = 0 : i64, scratch_operands = 0 : i64, tpu.core_type = #tpu.core_type<tc>, window_params = [{transform_indices = @transform_0, window_bounds = array<i64: 1, 4, 512>}, {pipeline_mode = #tpu.pipeline_mode<synchronous>, transform_indices = @transform_1, window_bounds = array<i64: 9, 8, 4>}, {pipeline_mode = #tpu.pipeline_mode<synchronous>, transform_indices = @transform_2, window_bounds = array<i64: 8, 1>}, {transform_indices = @transform_3, window_bounds = array<i64: 1, 8, 384>}]} {
    %c0 = arith.constant 0 : index
    %c0_0 = arith.constant 0 : index
    %0 = vector.load %arg3[%c0, %c0_0] : memref<8x1xf32, #tpu.memory_space<vmem>>, vector<8x1xf32>
    %1 = vector.shape_cast %0 : vector<8x1xf32> to vector<8x1xf32>
    %2 = vector.broadcast %1 : vector<8x1xf32> to vector<8x384xf32>
    %c0_1 = arith.constant 0 : index
    %c0_2 = arith.constant 0 : index
    %c0_3 = arith.constant 0 : index
    %3 = vector.load %arg1[%c0_1, %c0_2, %c0_3] : memref<1x4x512xf32, #tpu.memory_space<vmem>>, vector<1x4x384xf32>
    %4 = vector.shape_cast %3 : vector<1x4x384xf32> to vector<4x384xf32>
    %c0_4 = arith.constant 0 : index
    %c0_5 = arith.constant 0 : index
    %c0_6 = arith.constant 0 : index
    %5 = vector.load %arg2[%c0_4, %c0_5, %c0_6] : memref<9x8x4xf32, #tpu.memory_space<vmem>>, vector<1x8x4xf32>
    %6 = vector.shape_cast %5 : vector<1x8x4xf32> to vector<8x4xf32>
    %cst = arith.constant dense<0.000000e+00> : vector<8x384xf32>
    %7 = tpu.matmul %6, %4, %cst {dimension_numbers = #tpu.dot_dimension_numbers<[1], [0], [0], [1], [0, 0, 1, 1], [], []>} : vector<8x4xf32>, vector<4x384xf32>, vector<8x384xf32> -> vector<8x384xf32>
    %8 = arith.addf %2, %7 : vector<8x384xf32>
    %c0_7 = arith.constant 0 : index
    %c0_8 = arith.constant 0 : index
    %c1 = arith.constant 1 : index
    %9 = vector.load %arg1[%c0_7, %c0_8, %c1] : memref<1x4x512xf32, #tpu.memory_space<vmem>>, vector<1x4x384xf32>
    %10 = vector.shape_cast %9 : vector<1x4x384xf32> to vector<4x384xf32>
    %c1_9 = arith.constant 1 : index
    %c0_10 = arith.constant 0 : index
    %c0_11 = arith.constant 0 : index
    %11 = vector.load %arg2[%c1_9, %c0_10, %c0_11] : memref<9x8x4xf32, #tpu.memory_space<vmem>>, vector<1x8x4xf32>
    %12 = vector.shape_cast %11 : vector<1x8x4xf32> to vector<8x4xf32>
    %cst_12 = arith.constant dense<0.000000e+00> : vector<8x384xf32>
    %13 = tpu.matmul %12, %10, %cst_12 {dimension_numbers = #tpu.dot_dimension_numbers<[1], [0], [0], [1], [0, 0, 1, 1], [], []>} : vector<8x4xf32>, vector<4x384xf32>, vector<8x384xf32> -> vector<8x384xf32>
    %14 = arith.addf %8, %13 : vector<8x384xf32>
    %c0_13 = arith.constant 0 : index
    %c0_14 = arith.constant 0 : index
    %c2 = arith.constant 2 : index
    %15 = vector.load %arg1[%c0_13, %c0_14, %c2] : memref<1x4x512xf32, #tpu.memory_space<vmem>>, vector<1x4x384xf32>
    %16 = vector.shape_cast %15 : vector<1x4x384xf32> to vector<4x384xf32>
    %c2_15 = arith.constant 2 : index
    %c0_16 = arith.constant 0 : index
    %c0_17 = arith.constant 0 : index
    %17 = vector.load %arg2[%c2_15, %c0_16, %c0_17] : memref<9x8x4xf32, #tpu.memory_space<vmem>>, vector<1x8x4xf32>
    %18 = vector.shape_cast %17 : vector<1x8x4xf32> to vector<8x4xf32>
    %cst_18 = arith.constant dense<0.000000e+00> : vector<8x384xf32>
    %19 = tpu.matmul %18, %16, %cst_18 {dimension_numbers = #tpu.dot_dimension_numbers<[1], [0], [0], [1], [0, 0, 1, 1], [], []>} : vector<8x4xf32>, vector<4x384xf32>, vector<8x384xf32> -> vector<8x384xf32>
    %20 = arith.addf %14, %19 : vector<8x384xf32>
    %c0_19 = arith.constant 0 : index
    %c0_20 = arith.constant 0 : index
    %c18 = arith.constant 18 : index
    %21 = vector.load %arg1[%c0_19, %c0_20, %c18] : memref<1x4x512xf32, #tpu.memory_space<vmem>>, vector<1x4x384xf32>
    %22 = vector.shape_cast %21 : vector<1x4x384xf32> to vector<4x384xf32>
    %c3 = arith.constant 3 : index
    %c0_21 = arith.constant 0 : index
    %c0_22 = arith.constant 0 : index
    %23 = vector.load %arg2[%c3, %c0_21, %c0_22] : memref<9x8x4xf32, #tpu.memory_space<vmem>>, vector<1x8x4xf32>
    %24 = vector.shape_cast %23 : vector<1x8x4xf32> to vector<8x4xf32>
    %cst_23 = arith.constant dense<0.000000e+00> : vector<8x384xf32>
    %25 = tpu.matmul %24, %22, %cst_23 {dimension_numbers = #tpu.dot_dimension_numbers<[1], [0], [0], [1], [0, 0, 1, 1], [], []>} : vector<8x4xf32>, vector<4x384xf32>, vector<8x384xf32> -> vector<8x384xf32>
    %26 = arith.addf %20, %25 : vector<8x384xf32>
    %c0_24 = arith.constant 0 : index
    %c0_25 = arith.constant 0 : index
    %c19 = arith.constant 19 : index
    %27 = vector.load %arg1[%c0_24, %c0_25, %c19] : memref<1x4x512xf32, #tpu.memory_space<vmem>>, vector<1x4x384xf32>
    %28 = vector.shape_cast %27 : vector<1x4x384xf32> to vector<4x384xf32>
    %c4 = arith.constant 4 : index
    %c0_26 = arith.constant 0 : index
    %c0_27 = arith.constant 0 : index
    %29 = vector.load %arg2[%c4, %c0_26, %c0_27] : memref<9x8x4xf32, #tpu.memory_space<vmem>>, vector<1x8x4xf32>
    %30 = vector.shape_cast %29 : vector<1x8x4xf32> to vector<8x4xf32>
    %cst_28 = arith.constant dense<0.000000e+00> : vector<8x384xf32>
    %31 = tpu.matmul %30, %28, %cst_28 {dimension_numbers = #tpu.dot_dimension_numbers<[1], [0], [0], [1], [0, 0, 1, 1], [], []>} : vector<8x4xf32>, vector<4x384xf32>, vector<8x384xf32> -> vector<8x384xf32>
    %32 = arith.addf %26, %31 : vector<8x384xf32>
    %c0_29 = arith.constant 0 : index
    %c0_30 = arith.constant 0 : index
    %c20 = arith.constant 20 : index
    %33 = vector.load %arg1[%c0_29, %c0_30, %c20] : memref<1x4x512xf32, #tpu.memory_space<vmem>>, vector<1x4x384xf32>
    %34 = vector.shape_cast %33 : vector<1x4x384xf32> to vector<4x384xf32>
    %c5 = arith.constant 5 : index
    %c0_31 = arith.constant 0 : index
    %c0_32 = arith.constant 0 : index
    %35 = vector.load %arg2[%c5, %c0_31, %c0_32] : memref<9x8x4xf32, #tpu.memory_space<vmem>>, vector<1x8x4xf32>
    %36 = vector.shape_cast %35 : vector<1x8x4xf32> to vector<8x4xf32>
    %cst_33 = arith.constant dense<0.000000e+00> : vector<8x384xf32>
    %37 = tpu.matmul %36, %34, %cst_33 {dimension_numbers = #tpu.dot_dimension_numbers<[1], [0], [0], [1], [0, 0, 1, 1], [], []>} : vector<8x4xf32>, vector<4x384xf32>, vector<8x384xf32> -> vector<8x384xf32>
    %38 = arith.addf %32, %37 : vector<8x384xf32>
    %c0_34 = arith.constant 0 : index
    %c0_35 = arith.constant 0 : index
    %c36 = arith.constant 36 : index
    %39 = vector.load %arg1[%c0_34, %c0_35, %c36] : memref<1x4x512xf32, #tpu.memory_space<vmem>>, vector<1x4x384xf32>
    %40 = vector.shape_cast %39 : vector<1x4x384xf32> to vector<4x384xf32>
    %c6 = arith.constant 6 : index
    %c0_36 = arith.constant 0 : index
    %c0_37 = arith.constant 0 : index
    %41 = vector.load %arg2[%c6, %c0_36, %c0_37] : memref<9x8x4xf32, #tpu.memory_space<vmem>>, vector<1x8x4xf32>
    %42 = vector.shape_cast %41 : vector<1x8x4xf32> to vector<8x4xf32>
    %cst_38 = arith.constant dense<0.000000e+00> : vector<8x384xf32>
    %43 = tpu.matmul %42, %40, %cst_38 {dimension_numbers = #tpu.dot_dimension_numbers<[1], [0], [0], [1], [0, 0, 1, 1], [], []>} : vector<8x4xf32>, vector<4x384xf32>, vector<8x384xf32> -> vector<8x384xf32>
    %44 = arith.addf %38, %43 : vector<8x384xf32>
    %c0_39 = arith.constant 0 : index
    %c0_40 = arith.constant 0 : index
    %c37 = arith.constant 37 : index
    %45 = vector.load %arg1[%c0_39, %c0_40, %c37] : memref<1x4x512xf32, #tpu.memory_space<vmem>>, vector<1x4x384xf32>
    %46 = vector.shape_cast %45 : vector<1x4x384xf32> to vector<4x384xf32>
    %c7 = arith.constant 7 : index
    %c0_41 = arith.constant 0 : index
    %c0_42 = arith.constant 0 : index
    %47 = vector.load %arg2[%c7, %c0_41, %c0_42] : memref<9x8x4xf32, #tpu.memory_space<vmem>>, vector<1x8x4xf32>
    %48 = vector.shape_cast %47 : vector<1x8x4xf32> to vector<8x4xf32>
    %cst_43 = arith.constant dense<0.000000e+00> : vector<8x384xf32>
    %49 = tpu.matmul %48, %46, %cst_43 {dimension_numbers = #tpu.dot_dimension_numbers<[1], [0], [0], [1], [0, 0, 1, 1], [], []>} : vector<8x4xf32>, vector<4x384xf32>, vector<8x384xf32> -> vector<8x384xf32>
    %50 = arith.addf %44, %49 : vector<8x384xf32>
    %c0_44 = arith.constant 0 : index
    %c0_45 = arith.constant 0 : index
    %c38 = arith.constant 38 : index
    %51 = vector.load %arg1[%c0_44, %c0_45, %c38] : memref<1x4x512xf32, #tpu.memory_space<vmem>>, vector<1x4x384xf32>
    %52 = vector.shape_cast %51 : vector<1x4x384xf32> to vector<4x384xf32>
    %c8 = arith.constant 8 : index
    %c0_46 = arith.constant 0 : index
    %c0_47 = arith.constant 0 : index
    %53 = vector.load %arg2[%c8, %c0_46, %c0_47] : memref<9x8x4xf32, #tpu.memory_space<vmem>>, vector<1x8x4xf32>
    %54 = vector.shape_cast %53 : vector<1x8x4xf32> to vector<8x4xf32>
    %cst_48 = arith.constant dense<0.000000e+00> : vector<8x384xf32>
    %55 = tpu.matmul %54, %52, %cst_48 {dimension_numbers = #tpu.dot_dimension_numbers<[1], [0], [0], [1], [0, 0, 1, 1], [], []>} : vector<8x4xf32>, vector<4x384xf32>, vector<8x384xf32> -> vector<8x384xf32>
    %56 = arith.addf %50, %55 : vector<8x384xf32>
    %cst_49 = arith.constant 0.000000e+00 : f32
    %57 = vector.broadcast %cst_49 : f32 to vector<8x384xf32>
    %58 = arith.cmpf oge, %56, %57 : vector<8x384xf32>
    %cst_50 = arith.constant 2.000000e-01 : f32
    %59 = vector.broadcast %cst_50 : f32 to vector<8x384xf32>
    %60 = arith.mulf %59, %56 : vector<8x384xf32>
    %61 = arith.select %58, %56, %60 : vector<8x384xi1>, vector<8x384xf32>
    %c0_51 = arith.constant 0 : index
    %c0_52 = arith.constant 0 : index
    %c0_53 = arith.constant 0 : index
    %62 = vector.load %arg4[%c0_51, %c0_52, %c0_53] : memref<1x8x384xf32, #tpu.memory_space<vmem>>, vector<1x8x384xf32>
    %63 = vector.shape_cast %62 : vector<1x8x384xf32> to vector<8x384xf32>
    %64 = vector.shape_cast %61 : vector<8x384xf32> to vector<1x8x384xf32>
    tpu.vector_store %arg4[%c0_51, %c0_52, %c0_53], %64 {strides = array<i32>} : memref<1x8x384xf32, #tpu.memory_space<vmem>>, vector<1x8x384xf32>,
    return
  }
  func.func @transform_0(%arg0: i32) -> (i32, i32, i32) {
    %c0_i32 = arith.constant 0 : i32
    %c0_i32_0 = arith.constant 0 : i32
    %c0_i32_1 = arith.constant 0 : i32
    return %arg0, %c0_i32, %c0_i32_0 : i32, i32, i32
  }
  func.func @transform_1(%arg0: i32) -> (i32, i32, i32) {
    %c0_i32 = arith.constant 0 : i32
    %c0_i32_0 = arith.constant 0 : i32
    %c0_i32_1 = arith.constant 0 : i32
    %c0_i32_2 = arith.constant 0 : i32
    return %c0_i32, %c0_i32_0, %c0_i32_1 : i32, i32, i32
  }
  func.func @transform_2(%arg0: i32) -> (i32, i32) {
    %c0_i32 = arith.constant 0 : i32
    %c0_i32_0 = arith.constant 0 : i32
    %c0_i32_1 = arith.constant 0 : i32
    return %c0_i32, %c0_i32_0 : i32, i32
  }
  func.func @transform_3(%arg0: i32) -> (i32, i32, i32) {
    %c0_i32 = arith.constant 0 : i32
    %c0_i32_0 = arith.constant 0 : i32
    %c0_i32_1 = arith.constant 0 : i32
    return %arg0, %c0_i32, %c0_i32_0 : i32, i32, i32
  }
}

</mosaic_0001>

<bundles_post_ra>
// kernel: tpu_custom_call.1
= control target key start
LH: loop header
LB: loop body
LE: loop exit
PB: predicated region body
PF: predicated region fallthrough
CT: control target
= control target key end

     0   :  { %8 = vsyncpa [#allocation3], 0  ;;  %s2329_s0 = inlined_call_operand.vmem [shape: f32[2,4,512], index: 0, kind: input, shape index: {}]   ;;  %s2330_s1 = inlined_call_operand.vmem [shape: f32[9,8,4], index: 1, kind: input, shape index: {}]   ;;  %s2331_s2 = inlined_call_operand.vmem [shape: f32[8,1], index: 2, kind: input, shape index: {}]   ;;  %s2332_s3 = inlined_call_operand.hbm [shape: f32[2,8,384], index: 3, kind: output, shape index: {}]  }
   0x1   :  { %10 = vsyncpa [#allocation3 + $0x1], 0  ;;  %s2118_s12 = smov 0   ;;  %s2120_s13 = smov 0  }
   0x2   :  { %s2122_s14 = smov 0   ;;  %s2124_s15 = smov 0  }
   0x3 LB: > { %s2139_s16 = sadd.s32 4294967295, %s2084_s15   ;;  %s1806_s17 = sadd.s32 4294967294, %s2084_s15   ;;  %s2084_s15 = sphi %s2124_s15, %s2338_s15   ;;  %s2080_s14 = sphi %s2122_s14, %s2337_s14   ;;  %s2076_s13 = sphi %s2120_s13, %s2336_s13   ;;  %s2072_s12 = sphi %s2118_s12, %s2335_s12  }
   0x4   : > { %s2143_s18 = sadd.s32 1, %s2084_s15   ;;  %s91_s19 = sadd.s32 1, %s2080_s14 }
   0x5   : > { %s88_s20 = ssub.s32 %s2084_s15, %s2143_s18  ;;  %p101_p0 = scmp.ne.s32.totalorder %s2080_s14, %s2076_s13 }
   0x6   : > { %p89_p1 = scmp.eq.s32.totalorder %s88_s20, 0  ;;  %p102_p2 = scmp.eq.s32.totalorder %s2139_s16, 1 }
   0x7   : > { %p107_p3 = scmp.ne.s32.totalorder %s2076_s13, %s2072_s12  ;;  %p108_p4 = scmp.eq.s32.totalorder %s1806_s17, 1 }
   0x8   : > { %s2154_s21 = scalar_select %p89_p1, %s2080_s14, %s91_s19  }
   0x9   : > { %p2156_p5 = por %p102_p2, %p101_p0  ;;  %p2160_p6 = por %p108_p4, %p107_p3 }
   0xa   : > { %p1809_p7 = scmp.ge.s32.totalorder %s2084_s15, 1  ;;  %p140_p8 = scmp.lt.s32.totalorder %s2084_s15, 3 }
   0xc   : > { %p141_p9 = pnand %p1809_p7, %p140_p8 }
   0xd   : > { %p164_p10 = scmp.lt.s32.totalorder (!%p141_p9), %s2139_s16, 1  ;;  %v2086_v0 = vmov (!%p141_p9), 0.0   ;;  %vm2087_vm0 = vmmov (!%p141_p9), 0   ;;  %vm185_vm1 = vcmask (!%p141_p9), 1043456   ;;  %v177_v1 = vld [vmem:[%s2330_s1] sm:$0xff] (!%p141_p9)  ;;  %vm181_vm2 = vcmask (!%p141_p9), 31744  }
   0xe   : > { %144 = sbr.rel (%p141_p9) target bundleno = 439 (0x1b7), region = 32  ;;  %1887 = vmatprep.subr.mxu1 (!%p141_p9), %v2086_v0  ;;  %1889 = vmatprep.mubr.msk.f32.mxu1 (!%p141_p9), %vm2087_vm0, %v2086_v0  ;;  %s2088_s4 = smov (!%p141_p9), 127   ;;  %v2095_v7 = vmov (!%p141_p9), 0   ;;  %v169_v8 = vld [vmem:[%s2331_s2] sm:$0xff] (!%p141_p9)  ;;  %vm352_vm3 = vcmask (!%p141_p9), 1039360   ;;  %v1817_v13 = vld [vmem:[%s2330_s1 + $0x8] sm:$0xff] (!%p141_p9) }
   0xf   : > { %256 = vmatprep.mubr.f32.mxu0 (!%p141_p9), %v2086_v0  ;;  %s2089_s5 = smov (!%p141_p9), 126   ;;  %s2090_s6 = smov (!%p141_p9), 110   ;;  %2019 = vset.pattern.permute.xlu0 (!%p141_p9), %v2095_v7  ;;  %vm525_vm4 = vcmask (!%p141_p9), 1031168   ;;  %v1823_v23 = vld [vmem:[%s2330_s1 + $0x10] sm:$0xff] (!%p141_p9)  ;;  %vm698_vm5 = vcmask (!%p141_p9), 900096   ;;  %v1829_v31 = vld [vmem:[%s2330_s1 + $0x18] sm:$0xff] (!%p141_p9) }
  0x10   : > { %s2091_s7 = smov (!%p141_p9), 109   ;;  %s2092_s8 = smov (!%p141_p9), 108   ;;  %vm871_vm6 = vcmask (!%p141_p9), 891904   ;;  %v1835_v39 = vld [vmem:[%s2330_s1 + $0x20] sm:$0xff] (!%p141_p9)  ;;  %vm1044_vm7 = vcmask (!%p141_p9), 883712   ;;  %v1841_v47 = vld [vmem:[%s2330_s1 + $0x28] sm:$0xff] (!%p141_p9) }
  0x11   : > { %s2093_s9 = smov (!%p141_p9), 92   ;;  %s2094_s10 = smov (!%p141_p9), 91   ;;  %vm1217_vm8 = vcmask (!%p141_p9), 752640   ;;  %v1847_v55 = vld [vmem:[%s2330_s1 + $0x30] sm:$0xff] (!%p141_p9)  ;;  %vm1390_vm9 = vcmask (!%p141_p9), 744448   ;;  %v1853_v63 = vld [vmem:[%s2330_s1 + $0x38] sm:$0xff] (!%p141_p9) }
  0x12   : > { %s2096_s11 = smov (!%p141_p9), 90   ;;  %vm1563_vm10 = vcmask (!%p141_p9), 736256   ;;  %s161_s17 = sand.u32 (!%p141_p9), 1, %s2076_s13  }
  0x13   : > { %s1967_s19 = smul.u32 (!%p141_p9), 24, %s161_s17  ;;  %s2097_s30 = smov (!%p141_p9), [#allocation2]  }
  0x14   : > { %s1968_s20 = smul.u32 (!%p141_p9), 384, %s2139_s16 }
  0x15   : > { %s165_s24 = scalar_select %p164_p10, %s2139_s16, 1 }
  0x16   : > { %s1733_s16 = scalar_lea.sflag [#allocation3], %s161_s17 }
  0x17   : > { %s1868_s25 = sshll.u32 %s165_s24, 4  ;;  %s163_s24 = scalar_lea.vmem [#allocation2], %s1967_s19 }
  0x18   : > { %s168_s28 = scalar_lea.vmem %s2329_s0, %s1868_s25  ;;  %s1747_s25 = sshll.u32 %s163_s24, 4  ;;  %s2289_s25 = int_to_ptr.vmem [resolvable:$true] %s1747_s25 }
  0x19   : > { %v336_v2 = vld [vmem:[%s168_s28] sm:$0xff]  ;;  %v337_v3 = vld [vmem:[%s168_s28 + $0x8] sm:$0xff]  ;;  %s2022_s29 = scalar_lea.vmem %s2289_s25, 384 }
  0x1a   : > { %v176_v4 = vld [vmem:[%s168_s28 + $0x8] sm:$0xf]  ;;  %344 = vrot.lane.b32.xlu1 %v336_v2, %s2088_s4  ;;  %v342_v5 = vcombine.high %v336_v2, %v336_v2  ;;  %v343_v6 = vcombine.high %v337_v3, %v337_v3  ;;  %s2287_s28 = scalar_lea.hbm %s2332_s3, %s1968_s20  ;;  %p2023_p11 = scmp.ne.s32.totalorder %s2289_s25, %s2022_s29 }
  0x1b   : > { %1888 = vmatpush3.msk.msra.mxu1 %vm185_vm1, %v176_v4 }
  0x1c   : > { %1890 = vmatmul.mubr.msk.f32.vlgmr.msra.gmra.mrb[0].mxu1 %vm181_vm2, %v177_v1  ;;  %1892 = vmatprep.subr.mxu1 %v2086_v0  ;;  %p2024_p12 = pnand %p2023_p11, %p2156_p5 }
  0x1d   : > { %346 = vrot.lane.b32.xlu0 %v342_v5, %s2088_s4  ;;  %1812 = vmatprep.subr.msk.mxu0 %vm185_vm1, %v342_v5 }
  0x1e   : > { %1813 = vmatpush1.msk.msra.mxu0 %vm185_vm1, %v336_v2  ;;  %1894 = vmatprep.mubr.msk.f32.mxu1 %vm2087_vm0, %v2086_v0  ;;  %p2025_p13 = pneg %p2024_p12 }
  0x1f   : > { %350 = vrot.lane.b32.xlu1 %v343_v6, %s2088_s4  ;;  %1814 = vmatmul.mubr.msk.f32.vlgmr.msra.gmra.mrb[0].mxu0 %vm181_vm2, %v177_v1 }
  0x20   : > { %429 = vmatprep.mubr.f32.mxu0 %v2086_v0 }
  0x21   : > { %348 = vrot.lane.b32.xlu0 %v337_v3, %s2088_s4  ;;  %s2026_s4 = sshll.u32 %s2097_s30, 4  ;;  %s2027_s4 = int_to_ptr.vmem [resolvable:$false] %s2026_s4 }
  0x22   : > { %p2029_p0 = scmp.lt.s32.totalorder %s2289_s25, %s2027_s4 }
  0x23   : > { %521 = vrot.lane.b32.xlu1 %v337_v3, %s2089_s5 }
  0x25   : > { %519 = vrot.lane.b32.xlu0 %v342_v5, %s2089_s5 }
  0x27   : > { %523 = vrot.lane.b32.xlu1 %v343_v6, %s2089_s5 }
  0x29   : > { %517 = vrot.lane.b32.xlu0 %v336_v2, %s2089_s5  ;;  %s2028_s5 = scalar_lea.vmem %s2027_s4, 768 }
  0x2a   : > { %p2030_p1 = scmp.lt.s32.totalorder %s2028_s5, %s2022_s29 }
  0x2b   : > { %694 = vrot.lane.b32.xlu1 %v337_v3, %s2090_s6 }
  0x2c   : > { %p2031_p2 = por %p2030_p1, %p2029_p0 }
  0x2d   : > { %692 = vrot.lane.b32.xlu0 %v342_v5, %s2090_s6 }
  0x2e   : > { %p2032_p3 = pnand %p2031_p2, %p2025_p13 }
  0x2f   : > { %696 = vrot.lane.b32.xlu1 %v343_v6, %s2090_s6 }
  0x31   : > { %690 = vrot.lane.b32.xlu0 %v336_v2, %s2090_s6 }
  0x33   : > { %867 = vrot.lane.b32.xlu1 %v337_v3, %s2091_s7 }
  0x35   : > { %865 = vrot.lane.b32.xlu0 %v342_v5, %s2091_s7 }
  0x37   : > { %869 = vrot.lane.b32.xlu1 %v343_v6, %s2091_s7 }
  0x39   : > { %863 = vrot.lane.b32.xlu0 %v336_v2, %s2091_s7 }
  0x3b   : > { %1040 = vrot.lane.b32.xlu1 %v337_v3, %s2092_s8 }
  0x3d   : > { %1038 = vrot.lane.b32.xlu0 %v342_v5, %s2092_s8 }
  0x3f   : > { %1042 = vrot.lane.b32.xlu1 %v343_v6, %s2092_s8 }
  0x41   : > { %1036 = vrot.lane.b32.xlu0 %v336_v2, %s2092_s8 }
  0x43   : > { %1213 = vrot.lane.b32.xlu1 %v337_v3, %s2093_s9 }
  0x45   : > { %1211 = vrot.lane.b32.xlu0 %v342_v5, %s2093_s9 }
  0x47   : > { %1215 = vrot.lane.b32.xlu1 %v343_v6, %s2093_s9 }
  0x49   : > { %1209 = vrot.lane.b32.xlu0 %v336_v2, %s2093_s9 }
  0x4b   : > { %1386 = vrot.lane.b32.xlu1 %v337_v3, %s2094_s10 }
  0x4d   : > { %1384 = vrot.lane.b32.xlu0 %v342_v5, %s2094_s10 }
  0x4f   : > { %1388 = vrot.lane.b32.xlu1 %v343_v6, %s2094_s10 }
  0x51   : > { %1382 = vrot.lane.b32.xlu0 %v336_v2, %s2094_s10 }
  0x53   : > { %1559 = vrot.lane.b32.xlu1 %v337_v3, %s2096_s11 }
  0x55   : > { %1557 = vrot.lane.b32.xlu0 %v342_v5, %s2096_s11 }
  0x57   : > { %1561 = vrot.lane.b32.xlu1 %v343_v6, %s2096_s11 }
  0x59   : > { %1555 = vrot.lane.b32.xlu0 %v336_v2, %s2096_s11 }
  0x5d   : > { %172 = vperm.xlu0 %2019, %v169_v8   ;;  %v1859_v8 = vld [vmem:[%s2330_s1 + $0x40] sm:$0xff] }
  0x8c   : > { %v345_v9 = vpop.permute.xlu1 %344 }
  0x8f   : > { %v347_v10 = vpop.permute.xlu0 %346 }
  0x90   : > { %v353_v16 = vsel %vm352_vm3, %v345_v9, %v347_v10 }
  0x91   : > { %v351_v11 = vpop.permute.xlu1 %350 }
  0x93   : > { %v349_v12 = vpop.permute.xlu0 %348 }
  0x94   : > { %v354_v14 = vsel %vm352_vm3, %v347_v10, %v349_v12  ;;  %v355_v15 = vsel %vm352_vm3, %v349_v12, %v351_v11 }
  0x95   : > { %v522_v17 = vpop.permute.xlu1 %521  ;;  %1818 = vmatprep.subr.msk.mxu0 %vm185_vm1, %v354_v14  ;;  %1893 = vmatpush3.msk.msra.mxu1 %vm185_vm1, %v355_v15 }
  0x96   : > { %1819 = vmatpush1.msk.msra.mxu0 %vm185_vm1, %v353_v16  ;;  %1895 = vmatmul.mubr.msk.f32.vlgmr.msra.gmra.mrb[0].mxu1 %vm181_vm2, %v1817_v13 }
  0x97   : > { %v520_v18 = vpop.permute.xlu0 %519  ;;  %1820 = vmatmul.mubr.msk.f32.vlgmr.msra.gmra.mrb[0].mxu0 %vm181_vm2, %v1817_v13  ;;  %1897 = vmatprep.subr.mxu1 %v2086_v0 }
  0x98   : > { %v527_v19 = vsel %vm525_vm4, %v520_v18, %v522_v17  ;;  %1899 = vmatprep.mubr.msk.f32.mxu1 %vm2087_vm0, %v2086_v0  ;;  %602 = vmatprep.mubr.f32.mxu0 %v2086_v0 }
  0x99   : > { %v524_v20 = vpop.permute.xlu1 %523  ;;  %1824 = vmatprep.subr.msk.mxu0 %vm185_vm1, %v527_v19 }
  0x9a   : > { %v528_v21 = vsel %vm525_vm4, %v522_v17, %v524_v20 }
  0x9b   : > { %v518_v22 = vpop.permute.xlu0 %517  ;;  %1898 = vmatpush3.msk.msra.mxu1 %vm185_vm1, %v528_v21 }
  0x9c   : > { %v526_v24 = vsel %vm525_vm4, %v518_v22, %v520_v18  ;;  %1902 = vmatprep.subr.mxu1 %v2086_v0 }
  0x9d   : > { %v695_v25 = vpop.permute.xlu1 %694  ;;  %1825 = vmatpush1.msk.msra.mxu0 %vm185_vm1, %v526_v24 }
  0x9e   : > { %1900 = vmatmul.mubr.msk.f32.vlgmr.msra.gmra.mrb[0].mxu1 %vm181_vm2, %v1823_v23 }
  0x9f   : > { %v693_v26 = vpop.permute.xlu0 %692  ;;  %1826 = vmatmul.mubr.msk.f32.vlgmr.msra.gmra.mrb[0].mxu0 %vm181_vm2, %v1823_v23  ;;  %1904 = vmatprep.mubr.msk.f32.mxu1 %vm2087_vm0, %v2086_v0 }
  0xa0   : > { %v700_v27 = vsel %vm698_vm5, %v693_v26, %v695_v25  ;;  %775 = vmatprep.mubr.f32.mxu0 %v2086_v0 }
  0xa1   : > { %v697_v28 = vpop.permute.xlu1 %696  ;;  %1830 = vmatprep.subr.msk.mxu0 %vm185_vm1, %v700_v27 }
  0xa2   : > { %v701_v29 = vsel %vm698_vm5, %v695_v25, %v697_v28 }
  0xa3   : > { %v691_v30 = vpop.permute.xlu0 %690  ;;  %1903 = vmatpush3.msk.msra.mxu1 %vm185_vm1, %v701_v29 }
  0xa4   : > { %v699_v32 = vsel %vm698_vm5, %v691_v30, %v693_v26  ;;  %1907 = vmatprep.subr.mxu1 %v2086_v0 }
  0xa5   : > { %v868_v33 = vpop.permute.xlu1 %867  ;;  %1831 = vmatpush1.msk.msra.mxu0 %vm185_vm1, %v699_v32 }
  0xa6   : > { %1905 = vmatmul.mubr.msk.f32.vlgmr.msra.gmra.mrb[0].mxu1 %vm181_vm2, %v1829_v31 }
  0xa7   : > { %v866_v34 = vpop.permute.xlu0 %865  ;;  %1832 = vmatmul.mubr.msk.f32.vlgmr.msra.gmra.mrb[0].mxu0 %vm181_vm2, %v1829_v31  ;;  %1909 = vmatprep.mubr.msk.f32.mxu1 %vm2087_vm0, %v2086_v0 }
  0xa8   : > { %v873_v35 = vsel %vm871_vm6, %v866_v34, %v868_v33  ;;  %948 = vmatprep.mubr.f32.mxu0 %v2086_v0 }
  0xa9   : > { %v870_v36 = vpop.permute.xlu1 %869  ;;  %1836 = vmatprep.subr.msk.mxu0 %vm185_vm1, %v873_v35 }
  0xaa   : > { %v874_v37 = vsel %vm871_vm6, %v868_v33, %v870_v36 }
  0xab   : > { %v864_v38 = vpop.permute.xlu0 %863  ;;  %1908 = vmatpush3.msk.msra.mxu1 %vm185_vm1, %v874_v37 }
  0xac   : > { %v872_v40 = vsel %vm871_vm6, %v864_v38, %v866_v34  ;;  %1912 = vmatprep.subr.mxu1 %v2086_v0 }
  0xad   : > { %v1041_v41 = vpop.permute.xlu1 %1040  ;;  %1837 = vmatpush1.msk.msra.mxu0 %vm185_vm1, %v872_v40 }
  0xae   : > { %1910 = vmatmul.mubr.msk.f32.vlgmr.msra.gmra.mrb[0].mxu1 %vm181_vm2, %v1835_v39 }
  0xaf   : > { %v1039_v42 = vpop.permute.xlu0 %1038  ;;  %1838 = vmatmul.mubr.msk.f32.vlgmr.msra.gmra.mrb[0].mxu0 %vm181_vm2, %v1835_v39  ;;  %1914 = vmatprep.mubr.msk.f32.mxu1 %vm2087_vm0, %v2086_v0 }
  0xb0   : > { %v1046_v43 = vsel %vm1044_vm7, %v1039_v42, %v1041_v41  ;;  %1121 = vmatprep.mubr.f32.mxu0 %v2086_v0 }
  0xb1   : > { %v1043_v44 = vpop.permute.xlu1 %1042  ;;  %1842 = vmatprep.subr.msk.mxu0 %vm185_vm1, %v1046_v43 }
  0xb2   : > { %v1047_v45 = vsel %vm1044_vm7, %v1041_v41, %v1043_v44 }
  0xb3   : > { %v1037_v46 = vpop.permute.xlu0 %1036  ;;  %1913 = vmatpush3.msk.msra.mxu1 %vm185_vm1, %v1047_v45 }
  0xb4   : > { %v1045_v48 = vsel %vm1044_vm7, %v1037_v46, %v1039_v42  ;;  %1917 = vmatprep.subr.mxu1 %v2086_v0 }
  0xb5   : > { %v1214_v49 = vpop.permute.xlu1 %1213  ;;  %1843 = vmatpush1.msk.msra.mxu0 %vm185_vm1, %v1045_v48 }
  0xb6   : > { %1915 = vmatmul.mubr.msk.f32.vlgmr.msra.gmra.mrb[0].mxu1 %vm181_vm2, %v1841_v47 }
  0xb7   : > { %v1212_v50 = vpop.permute.xlu0 %1211  ;;  %1844 = vmatmul.mubr.msk.f32.vlgmr.msra.gmra.mrb[0].mxu0 %vm181_vm2, %v1841_v47  ;;  %1919 = vmatprep.mubr.msk.f32.mxu1 %vm2087_vm0, %v2086_v0 }
  0xb8   : > { %v1219_v51 = vsel %vm1217_vm8, %v1212_v50, %v1214_v49  ;;  %1294 = vmatprep.mubr.f32.mxu0 %v2086_v0 }
  0xb9   : > { %v1216_v52 = vpop.permute.xlu1 %1215  ;;  %1848 = vmatprep.subr.msk.mxu0 %vm185_vm1, %v1219_v51 }
  0xba   : > { %v1220_v53 = vsel %vm1217_vm8, %v1214_v49, %v1216_v52 }
  0xbb   : > { %v1210_v54 = vpop.permute.xlu0 %1209  ;;  %1918 = vmatpush3.msk.msra.mxu1 %vm185_vm1, %v1220_v53 }
  0xbc   : > { %v1218_v56 = vsel %vm1217_vm8, %v1210_v54, %v1212_v50  ;;  %1922 = vmatprep.subr.mxu1 %v2086_v0 }
  0xbd   : > { %v1387_v57 = vpop.permute.xlu1 %1386  ;;  %1849 = vmatpush1.msk.msra.mxu0 %vm185_vm1, %v1218_v56 }
  0xbe   : > { %1920 = vmatmul.mubr.msk.f32.vlgmr.msra.gmra.mrb[0].mxu1 %vm181_vm2, %v1847_v55 }
  0xbf   : > { %v1385_v58 = vpop.permute.xlu0 %1384  ;;  %1850 = vmatmul.mubr.msk.f32.vlgmr.msra.gmra.mrb[0].mxu0 %vm181_vm2, %v1847_v55  ;;  %1924 = vmatprep.mubr.msk.f32.mxu1 %vm2087_vm0, %v2086_v0 }
  0xc0   : > { %v1392_v59 = vsel %vm1390_vm9, %v1385_v58, %v1387_v57  ;;  %1467 = vmatprep.mubr.f32.mxu0 %v2086_v0 }
  0xc1   : > { %v1389_v60 = vpop.permute.xlu1 %1388  ;;  %1854 = vmatprep.subr.msk.mxu0 %vm185_vm1, %v1392_v59 }
  0xc2   : > { %v1393_v61 = vsel %vm1390_vm9, %v1387_v57, %v1389_v60 }
  0xc3   : > { %v1383_v62 = vpop.permute.xlu0 %1382  ;;  %1923 = vmatpush3.msk.msra.mxu1 %vm185_vm1, %v1393_v61 }
  0xc4   : > { %v1391_v1 = vsel %vm1390_vm9, %v1383_v62, %v1385_v58  ;;  %1927 = vmatprep.subr.mxu1 %v2086_v0 }
  0xc5   : > { %v1560_v2 = vpop.permute.xlu1 %1559  ;;  %1855 = vmatpush1.msk.msra.mxu0 %vm185_vm1, %v1391_v1 }
  0xc6   : > { %1925 = vmatmul.mubr.msk.f32.vlgmr.msra.gmra.mrb[0].mxu1 %vm181_vm2, %v1853_v63 }
  0xc7   : > { %v1558_v3 = vpop.permute.xlu0 %1557  ;;  %1856 = vmatmul.mubr.msk.f32.vlgmr.msra.gmra.mrb[0].mxu0 %vm181_vm2, %v1853_v63  ;;  %1929 = vmatprep.mubr.msk.f32.mxu1 %vm2087_vm0, %v2086_v0 }
  0xc8   : > { %v1565_v4 = vsel %vm1563_vm10, %v1558_v3, %v1560_v2  ;;  %1640 = vmatprep.mubr.f32.mxu0 %v2086_v0 }
  0xc9   : > { %v1562_v5 = vpop.permute.xlu1 %1561  ;;  %1860 = vmatprep.subr.msk.mxu0 %vm185_vm1, %v1565_v4 }
  0xca   : > { %v1566_v6 = vsel %vm1563_vm10, %v1560_v2, %v1562_v5 }
  0xcb   : > { %v1556_v7 = vpop.permute.xlu0 %1555  ;;  %1928 = vmatpush3.msk.msra.mxu1 %vm185_vm1, %v1566_v6 }
  0xcc   : > { %v1564_v9 = vsel %vm1563_vm10, %v1556_v7, %v1558_v3 }
  0xcd   : > { %1861 = vmatpush1.msk.msra.mxu0 %vm185_vm1, %v1564_v9 }
  0xce   : > { %1930 = vmatmul.mubr.msk.f32.vlgmr.msra.gmra.mrb[0].mxu1 %vm181_vm2, %v1859_v8 }
  0xcf   : > { %1862 = vmatmul.mubr.msk.f32.vlgmr.msra.gmra.mrb[0].mxu0 %vm181_vm2, %v1859_v8 }
  0xdc   : > { %v173_v0 = vpop.permute.xlu0 %172 }
 0x1a1   : > { %v1713_v10 = vpop.f32.mrb[0].mxu1 }
 0x1a2   : > { %v1934_v11 = vadd.f32 %v1713_v10, %v173_v0  ;;  %v1642_v12 = vpop.f32.mrb[0].mxu0  ;;  %v1931_v13 = vpop.f32.mrb[1].mxu1 }
 0x1a3   : > { %v1932_v14 = vadd.f32 %v1642_v12, %v173_v0  ;;  %v1644_v15 = vpop.f32.mrb[1].mxu0 }
 0x1a4   : > { %vm1722_vm11 = vcmp.ge.f32.partialorder %v1934_v11, 0.0  ;;  %v1725_v16 = vmul.f32 0.2, %v1934_v11  ;;  %v1933_v17 = vadd.f32 %v1644_v15, %v173_v0 }
 0x1a5   : > { %vm1720_vm12 = vcmp.ge.f32.partialorder %v1932_v14, 0.0  ;;  %v1723_v18 = vmul.f32 0.2, %v1932_v14 }
 0x1a6   : > { %v1728_v19 = vsel %vm1722_vm11, %v1934_v11, %v1725_v16  ;;  %vm1721_vm13 = vcmp.ge.f32.partialorder %v1933_v17, 0.0  ;;  %v1724_v20 = vmul.f32 0.2, %v1933_v17 }
 0x1a7   : > { %1731 = vst [vmem:[%s163_s24 + $0x10] sm:$0xff] %v1728_v19  ;;  %v1726_v21 = vsel %vm1720_vm12, %v1932_v14, %v1723_v18 }
 0x1a8   : > { %1729 = vst [vmem:[%s163_s24] sm:$0xff] %v1726_v21  ;;  %v1727_v22 = vsel %vm1721_vm13, %v1933_v17, %v1724_v20 }
 0x1a9   : > { %1730 = vst [vmem:[%s163_s24 + $0x8] sm:$0xff] %v1727_v22 }
 0x1aa   : > { %2035 = shalt.err (!%p2032_p3)
}
 0x1ab   : > { %s2036_s6 = scalar_lea.hbm %s2287_s28, 384  ;;  %s2040_s9 = scalar_lea.hbm %s2332_s3, 768 }
 0x1ac   : > { %p2037_p4 = scmp.ne.s32.totalorder %s2287_s28, %s2036_s6  ;;  %p2041_p9 = scmp.lt.u32.totalorder %s2287_s28, %s2332_s3 }
 0x1ad   : > { %p2042_p10 = scmp.lt.u32.totalorder %s2040_s9, %s2036_s6  ;;  %p2044_p12 = scmp.lt.u32.totalorder %s2036_s6, %s2287_s28 }
 0x1ae   : > { %p2038_p7 = pnand %p2037_p4, %p2156_p5 }
 0x1af   : > { %p2043_p11 = por %p2042_p10, %p2041_p9 }
 0x1b0   : > { %p2039_p8 = pneg %p2038_p7 }
 0x1b1   : > { %p2045_p13 = por %p2044_p12, %p2043_p11 }
 0x1b3   : > { %p2046_p0 = pnand %p2045_p13, %p2039_p8 }
 0x1b5   : > { %2049 = shalt.err (!%p2046_p0)
}
 0x1b6   : > { %1969 = dma.vmem_to_hbm [thread:$0]  (%p2156_p5), %s2289_s25, 384, %s2287_s28, %s1733_s16  }
 0x1b7 PF: > { %p1975_p1 = scmp.ge.s32.totalorder %s2084_s15, 2  ;;  %s1759_s17 = sand.u32 1, %s2072_s12  }
 0x1b8   : > { %s1760_s19 = scalar_lea.sflag [#allocation3], %s1759_s17 }
 0x1b9   : > { %p1972_p2 = pnand %p1975_p1, %p2160_p6 }
 0x1bb   : > { %2067 = dma.done.wait (!%p1972_p2), %s1760_s19, 384  }
 0x1bc   : > { %2069 = vsyncadd (!%p1972_p2), %s1760_s19, 4294966912  ;;  %p13_p3 = scmp.ge.s32.totalorder %s2143_s18, 4   ;;  %s2335_s12 = smov %s2076_s13 }
 0x1bd   : > { %s2336_s13 = smov %s2080_s14  ;;  %s2337_s14 = smov %s2154_s21 }
 0x1be   : > { %s2338_s15 = smov %s2143_s18  ;;  %15 = sbr.rel (!%p13_p3) target bundleno = 3 (0x3), region = 75 }
 0x1c5   :  { %1765 = vsyncpa [#allocation3], 1 }
 0x1c6   :  { %1767 = vsyncpa [#allocation3 + $0x1], 1 }

</bundles_post_ra>
